<compile_context>
chip_gen: v7x
topology: tpu7x:2x2x1
jax: 0.10.0
libtpu: 0.0.40
codegen_flags: <defaults>
</compile_context>

<pallas_src>
import math

import jax
import jax.numpy as jnp
from jax.experimental import pallas as pl
from jax.experimental.pallas import tpu as pltpu

_LANES = 128          # full lane width -> unmasked, dense vector stores
_MAX_TILE_ROWS = 1024 # 1024 x 128 f32 = 512 KiB per f32 buffer; 8 buffers + double
                      # buffering ~ 5.8 MiB VMEM, safe on all of v5e/v6e/v7x


def _elementwise_kernel(x_ref,
                        add_ref, sub_ref, mul_ref, div_ref,
                        gt_ref, lt_ref, eq_ref):
    x = x_ref[...]
    add_ref[...] = x + 5.0
    sub_ref[...] = x - 2.0
    mul_ref[...] = x * 3.0
    div_ref[...] = x * 0.25          # exact equivalent of x / 4.0 (power-of-two divisor)
    # Bool outputs written directly (stored as 8-bit masks) -- no wrapper casts needed.
    gt_ref[...] = x > 1.0
    lt_ref[...] = x < 10.0
    eq_ref[...] = x == 3.0


def pt_module_forward(x):
    orig_shape = x.shape
    dtype = x.dtype
    total = math.prod(orig_shape)

    # ---- flatten to a lane-dense (rows, 128) layout --------------------------------
    padded_total = pl.cdiv(total, _LANES) * _LANES
    x_flat = x.reshape(-1)
    if padded_total != total:
        x_flat = jnp.pad(x_flat, (0, padded_total - total))
    rows = padded_total // _LANES

    # ---- choose a row tile (full-dim for small inputs, 1024-row blocks otherwise) --
    if rows <= _MAX_TILE_ROWS:
        tile_rows = rows                      # single block == full dim (always legal)
        padded_rows = rows
    else:
        tile_rows = _MAX_TILE_ROWS            # multiple of 8 -> legal sublane tiling
        padded_rows = pl.cdiv(rows, tile_rows) * tile_rows
        if padded_rows != rows:
            x_flat = jnp.pad(x_flat, (0, (padded_rows - rows) * _LANES))

    x2d = x_flat.reshape(padded_rows, _LANES)
    grid = (padded_rows // tile_rows,)

    block_spec = pl.BlockSpec((tile_rows, _LANES), lambda i: (i, 0))

    out_shapes = (
        jax.ShapeDtypeStruct((padded_rows, _LANES), dtype),       # addition
        jax.ShapeDtypeStruct((padded_rows, _LANES), dtype),       # subtraction
        jax.ShapeDtypeStruct((padded_rows, _LANES), dtype),       # multiplication
        jax.ShapeDtypeStruct((padded_rows, _LANES), dtype),       # division
        jax.ShapeDtypeStruct((padded_rows, _LANES), jnp.bool_),   # greater_than
        jax.ShapeDtypeStruct((padded_rows, _LANES), jnp.bool_),   # less_than
        jax.ShapeDtypeStruct((padded_rows, _LANES), jnp.bool_),   # equal_to
    )

    outs = pl.pallas_call(
        _elementwise_kernel,
        out_shape=out_shapes,
        grid=grid,
        in_specs=[block_spec],
        out_specs=tuple(block_spec for _ in out_shapes),
        compiler_params=pltpu.CompilerParams(
            dimension_semantics=("parallel",),   # shard across TCs on v7x megacore
        ),
    )(x2d)

    # ---- restore original NCHW shape (drop padding) --------------------------------
    def _restore(o):
        return o.reshape(-1)[:total].reshape(orig_shape)

    return tuple(_restore(o) for o in outs)


if __name__ == "__main__":
    key = jax.random.PRNGKey(0)
    # Small shape consistent with a generic 4-D tensor input (NCHW).
    x = jax.random.normal(key, (2, 4, 16, 16), dtype=jnp.float32) * 4.0

    outs = pt_module_forward(x)
    outs = jax.block_until_ready(outs)

    # Lightweight correctness check against plain JAX reference.
    refs = (x + 5, x - 2, x * 3, x / 4, x > 1, x < 10, x == 3)
    for got, ref in zip(outs, refs):
        assert got.shape == ref.shape, (got.shape, ref.shape)
        assert got.dtype == ref.dtype, (got.dtype, ref.dtype)
        assert jnp.array_equal(got, ref), "mismatch"

    print("KERNEL_OK")
</pallas_src>

<mosaic_0001>
module attributes {stable_mosaic.version = 11 : i64} {
  func.func @_elementwise_kernel(%arg0: i32, %arg1: memref<16x128xf32, #tpu.memory_space<vmem>>, %arg2: memref<16x128xf32, #tpu.memory_space<vmem>>, %arg3: memref<16x128xf32, #tpu.memory_space<vmem>>, %arg4: memref<16x128xf32, #tpu.memory_space<vmem>>, %arg5: memref<16x128xf32, #tpu.memory_space<vmem>>, %arg6: memref<16x128xi32, #tpu.memory_space<vmem>>, %arg7: memref<16x128xi32, #tpu.memory_space<vmem>>, %arg8: memref<16x128xi32, #tpu.memory_space<vmem>>) attributes {dimension_semantics = [#tpu.dimension_semantics<parallel>], iteration_bounds = array<i64: 1>, scalar_prefetch = 0 : i64, scratch_operands = 0 : i64, tpu.core_type = #tpu.core_type<tc>, window_params = [{transform_indices = @transform_0, window_bounds = array<i64: 16, 128>}, {transform_indices = @transform_1, window_bounds = array<i64: 16, 128>}, {transform_indices = @transform_2, window_bounds = array<i64: 16, 128>}, {transform_indices = @transform_3, window_bounds = array<i64: 16, 128>}, {transform_indices = @transform_4, window_bounds = array<i64: 16, 128>}, {transform_indices = @transform_5, window_bounds = array<i64: 16, 128>}, {transform_indices = @transform_6, window_bounds = array<i64: 16, 128>}, {transform_indices = @transform_7, window_bounds = array<i64: 16, 128>}]} {
    %c0 = arith.constant 0 : index
    %c0_0 = arith.constant 0 : index
    %0 = vector.load %arg1[%c0, %c0_0] : memref<16x128xf32, #tpu.memory_space<vmem>>, vector<16x128xf32>
    %cst = arith.constant 5.000000e+00 : f32
    %1 = vector.broadcast %cst : f32 to vector<16x128xf32>
    %2 = arith.addf %0, %1 : vector<16x128xf32>
    %c0_1 = arith.constant 0 : index
    %c0_2 = arith.constant 0 : index
    %3 = vector.load %arg2[%c0_1, %c0_2] : memref<16x128xf32, #tpu.memory_space<vmem>>, vector<16x128xf32>
    tpu.vector_store %arg2[%c0_1, %c0_2], %2 {strides = array<i32>} : memref<16x128xf32, #tpu.memory_space<vmem>>, vector<16x128xf32>,
    %cst_3 = arith.constant 2.000000e+00 : f32
    %4 = vector.broadcast %cst_3 : f32 to vector<16x128xf32>
    %5 = arith.subf %0, %4 : vector<16x128xf32>
    %c0_4 = arith.constant 0 : index
    %c0_5 = arith.constant 0 : index
    %6 = vector.load %arg3[%c0_4, %c0_5] : memref<16x128xf32, #tpu.memory_space<vmem>>, vector<16x128xf32>
    tpu.vector_store %arg3[%c0_4, %c0_5], %5 {strides = array<i32>} : memref<16x128xf32, #tpu.memory_space<vmem>>, vector<16x128xf32>,
    %cst_6 = arith.constant 3.000000e+00 : f32
    %7 = vector.broadcast %cst_6 : f32 to vector<16x128xf32>
    %8 = arith.mulf %0, %7 : vector<16x128xf32>
    %c0_7 = arith.constant 0 : index
    %c0_8 = arith.constant 0 : index
    %9 = vector.load %arg4[%c0_7, %c0_8] : memref<16x128xf32, #tpu.memory_space<vmem>>, vector<16x128xf32>
    tpu.vector_store %arg4[%c0_7, %c0_8], %8 {strides = array<i32>} : memref<16x128xf32, #tpu.memory_space<vmem>>, vector<16x128xf32>,
    %cst_9 = arith.constant 2.500000e-01 : f32
    %10 = vector.broadcast %cst_9 : f32 to vector<16x128xf32>
    %11 = arith.mulf %0, %10 : vector<16x128xf32>
    %c0_10 = arith.constant 0 : index
    %c0_11 = arith.constant 0 : index
    %12 = vector.load %arg5[%c0_10, %c0_11] : memref<16x128xf32, #tpu.memory_space<vmem>>, vector<16x128xf32>
    tpu.vector_store %arg5[%c0_10, %c0_11], %11 {strides = array<i32>} : memref<16x128xf32, #tpu.memory_space<vmem>>, vector<16x128xf32>,
    %cst_12 = arith.constant 1.000000e+00 : f32
    %13 = vector.broadcast %cst_12 : f32 to vector<16x128xf32>
    %14 = arith.cmpf ogt, %0, %13 : vector<16x128xf32>
    %c0_13 = arith.constant 0 : index
    %c0_14 = arith.constant 0 : index
    %15 = vector.load %arg6[%c0_13, %c0_14] : memref<16x128xi32, #tpu.memory_space<vmem>>, vector<16x128xi32>
    %16 = arith.extui %14 : vector<16x128xi1> to vector<16x128xi32>
    %cst_15 = arith.constant dense<0> : vector<16x128xi32>
    %17 = arith.cmpi ne, %15, %cst_15 : vector<16x128xi32>
    tpu.vector_store %arg6[%c0_13, %c0_14], %16 {strides = array<i32>} : memref<16x128xi32, #tpu.memory_space<vmem>>, vector<16x128xi32>,
    %cst_16 = arith.constant 1.000000e+01 : f32
    %18 = vector.broadcast %cst_16 : f32 to vector<16x128xf32>
    %19 = arith.cmpf olt, %0, %18 : vector<16x128xf32>
    %c0_17 = arith.constant 0 : index
    %c0_18 = arith.constant 0 : index
    %20 = vector.load %arg7[%c0_17, %c0_18] : memref<16x128xi32, #tpu.memory_space<vmem>>, vector<16x128xi32>
    %21 = arith.extui %19 : vector<16x128xi1> to vector<16x128xi32>
    %cst_19 = arith.constant dense<0> : vector<16x128xi32>
    %22 = arith.cmpi ne, %20, %cst_19 : vector<16x128xi32>
    tpu.vector_store %arg7[%c0_17, %c0_18], %21 {strides = array<i32>} : memref<16x128xi32, #tpu.memory_space<vmem>>, vector<16x128xi32>,
    %cst_20 = arith.constant 3.000000e+00 : f32
    %23 = vector.broadcast %cst_20 : f32 to vector<16x128xf32>
    %24 = arith.cmpf oeq, %0, %23 : vector<16x128xf32>
    %c0_21 = arith.constant 0 : index
    %c0_22 = arith.constant 0 : index
    %25 = vector.load %arg8[%c0_21, %c0_22] : memref<16x128xi32, #tpu.memory_space<vmem>>, vector<16x128xi32>
    %26 = arith.extui %24 : vector<16x128xi1> to vector<16x128xi32>
    %cst_23 = arith.constant dense<0> : vector<16x128xi32>
    %27 = arith.cmpi ne, %25, %cst_23 : vector<16x128xi32>
    tpu.vector_store %arg8[%c0_21, %c0_22], %26 {strides = array<i32>} : memref<16x128xi32, #tpu.memory_space<vmem>>, vector<16x128xi32>,
    return
  }
  func.func @transform_0(%arg0: i32) -> (i32, i32) {
    %c0_i32 = arith.constant 0 : i32
    %c0_i32_0 = arith.constant 0 : i32
    return %arg0, %c0_i32 : i32, i32
  }
  func.func @transform_1(%arg0: i32) -> (i32, i32) {
    %c0_i32 = arith.constant 0 : i32
    %c0_i32_0 = arith.constant 0 : i32
    return %arg0, %c0_i32 : i32, i32
  }
  func.func @transform_2(%arg0: i32) -> (i32, i32) {
    %c0_i32 = arith.constant 0 : i32
    %c0_i32_0 = arith.constant 0 : i32
    return %arg0, %c0_i32 : i32, i32
  }
  func.func @transform_3(%arg0: i32) -> (i32, i32) {
    %c0_i32 = arith.constant 0 : i32
    %c0_i32_0 = arith.constant 0 : i32
    return %arg0, %c0_i32 : i32, i32
  }
  func.func @transform_4(%arg0: i32) -> (i32, i32) {
    %c0_i32 = arith.constant 0 : i32
    %c0_i32_0 = arith.constant 0 : i32
    return %arg0, %c0_i32 : i32, i32
  }
  func.func @transform_5(%arg0: i32) -> (i32, i32) {
    %c0_i32 = arith.constant 0 : i32
    %c0_i32_0 = arith.constant 0 : i32
    return %arg0, %c0_i32 : i32, i32
  }
  func.func @transform_6(%arg0: i32) -> (i32, i32) {
    %c0_i32 = arith.constant 0 : i32
    %c0_i32_0 = arith.constant 0 : i32
    return %arg0, %c0_i32 : i32, i32
  }
  func.func @transform_7(%arg0: i32) -> (i32, i32) {
    %c0_i32 = arith.constant 0 : i32
    %c0_i32_0 = arith.constant 0 : i32
    return %arg0, %c0_i32 : i32, i32
  }
}

</mosaic_0001>

<bundles_post_ra>
// kernel: tpu_custom_call.1
= control target key start
LH: loop header
LB: loop body
LE: loop exit
PB: predicated region body
PF: predicated region fallthrough
CT: control target
= control target key end

     0   :  { %13 = vsyncpa [#allocation3], 0  ;;  %s467_s0 = inlined_call_operand.hbm [shape: f32[16,128], index: 0, kind: input, shape index: {}]   ;;  %s468_s1 = inlined_call_operand.hbm [shape: f32[16,128], index: 1, kind: output, shape index: {0}]   ;;  %s469_s2 = inlined_call_operand.hbm [shape: f32[16,128], index: 2, kind: output, shape index: {1}]   ;;  %s470_s3 = inlined_call_operand.hbm [shape: f32[16,128], index: 3, kind: output, shape index: {2}]   ;;  %s471_s4 = inlined_call_operand.hbm [shape: f32[16,128], index: 4, kind: output, shape index: {3}]   ;;  %s472_s5 = inlined_call_operand.vmem [shape: s32[16,128], index: 5, kind: output, shape index: {4}]   ;;  %s473_s6 = inlined_call_operand.vmem [shape: s32[16,128], index: 6, kind: output, shape index: {5}]   ;;  %s474_s7 = inlined_call_operand.vmem [shape: s32[16,128], index: 7, kind: output, shape index: {6}]  }
   0x1   :  { %14 = vsyncpa [#allocation4], 0 }
   0x2   :  { %15 = vsyncpa [#allocation7], 0 }
   0x3   :  { %16 = vsyncpa [#allocation10], 0  ;;  %s272_s24 = smov [#allocation2]   ;;  %s154_s28 = scalar_lea.hbm %s467_s0, 256 }
   0x4   :  { %s22_s25 = sshll.u32 %s272_s24, 4  ;;  %p155_p0 = scmp.ne.s32.totalorder %s467_s0, %s154_s28  ;;  %s23_s25 = int_to_ptr.vmem [resolvable:$true] %s22_s25 }
   0x5   :  { %p158_p1 = scmp.lt.u32.totalorder %s154_s28, %s467_s0 }
   0x7   :  { %p160_p2 = pnand %p158_p1, %p155_p0 }
   0x9   :  { %163 = shalt.err (!%p160_p2)
}
   0xa   :  { %s164_s10 = scalar_lea.vmem %s23_s25, 256  ;;  %p169_p4 = scmp.lt.s32.totalorder %s23_s25, %s23_s25 }
   0xb   :  { %p165_p3 = scmp.ne.s32.totalorder %s23_s25, %s164_s10  ;;  %p170_p5 = scmp.lt.s32.totalorder %s164_s10, %s164_s10 }
   0xd   :  { %p171_p6 = por %p170_p5, %p169_p4 }
   0xf   :  { %p172_p7 = pnand %p171_p6, %p165_p3 }
  0x11   :  { %175 = shalt.err (!%p172_p7)
}
  0x12   :  { %s273_s11 = smov 128   ;;  %s274_s12 = smov 8  }
  0x13   :  { %28 = dma.hbm_to_vmem [thread:$0]  %s467_s0, 256, %s23_s25, [#allocation3], %s273_s11, %s273_s11, %s274_s12  }
  0x14   :  { %264 = dma.done.wait [#allocation3], 256  }
  0x15   :  { %265 = vsyncadd [#allocation3], 4294967040  ;;  %s275_s15 = smov [#allocation6]   ;;  %s276_s17 = smov [#allocation5]   ;;  %v335_v0 = vld [vmem:[#allocation2] sm:$0xff]  ;;  %v337_v1 = vld [vmem:[#allocation2 + $0x8] sm:$0xff] }
  0x16   :  { %s85_s16 = sshll.u32 %s275_s15, 4  ;;  %s73_s18 = sshll.u32 %s276_s17, 4  ;;  %v144_v2 = vadd.f32 -2.0, %v335_v0  ;;  %v145_v3 = vadd.f32 -2.0, %v337_v1  ;;  %v34_v4 = vadd.f32 5.0, %v335_v0  ;;  %v35_v5 = vadd.f32 5.0, %v337_v1  ;;  %s343_s16 = int_to_ptr.vmem [resolvable:$true] %s85_s16  ;;  %s349_s18 = int_to_ptr.vmem [resolvable:$true] %s73_s18 }
  0x17   :  { %s277_s19 = smov [#allocation8]   ;;  %s278_s21 = smov [#allocation9]   ;;  %v42_v6 = vmul.f32 3.0, %v335_v0  ;;  %v43_v7 = vmul.f32 3.0, %v337_v1  ;;  %v46_v8 = vmul.f32 0.25, %v335_v0  ;;  %v47_v9 = vmul.f32 0.25, %v337_v1 }
  0x18   :  { %s97_s20 = sshll.u32 %s277_s19, 4  ;;  %s109_s22 = sshll.u32 %s278_s21, 4  ;;  %40 = vst [vmem:[#allocation6] sm:$0xff] %v144_v2  ;;  %41 = vst [vmem:[#allocation6 + $0x8] sm:$0xff] %v145_v3  ;;  %vm50_vm0 = vcmp.gt.f32.partialorder %v335_v0, 1.0  ;;  %vm51_vm1 = vcmp.gt.f32.partialorder %v337_v1, 1.0  ;;  %s355_s20 = int_to_ptr.vmem [resolvable:$true] %s97_s20  ;;  %s357_s22 = int_to_ptr.vmem [resolvable:$true] %s109_s22 }
  0x19   :  { %36 = vst [vmem:[#allocation5] sm:$0xff] %v34_v4  ;;  %37 = vst [vmem:[#allocation5 + $0x8] sm:$0xff] %v35_v5  ;;  %vm56_vm2 = vcmp.lt.f32.partialorder %v335_v0, 10.0  ;;  %vm57_vm3 = vcmp.lt.f32.partialorder %v337_v1, 10.0  ;;  %s176_s0 = scalar_lea.vmem %s343_s16, 256  ;;  %p181_p9 = scmp.lt.s32.totalorder %s343_s16, %s343_s16 }
  0x1a   :  { %44 = vst [vmem:[#allocation8] sm:$0xff] %v42_v6  ;;  %45 = vst [vmem:[#allocation8 + $0x8] sm:$0xff] %v43_v7  ;;  %p177_p8 = scmp.ne.s32.totalorder %s343_s16, %s176_s0  ;;  %p182_p10 = scmp.lt.s32.totalorder %s176_s0, %s176_s0 }
  0x1b   :  { %48 = vst [vmem:[#allocation9] sm:$0xff] %v46_v8  ;;  %49 = vst [vmem:[#allocation9 + $0x8] sm:$0xff] %v47_v9 }
  0x1c   :  { %p183_p11 = por %p182_p10, %p181_p9 }
  0x1e   :  { %p184_p12 = pnand %p183_p11, %p177_p8 }
  0x20   :  { %187 = shalt.err (!%p184_p12)
}
  0x21   :  { %s188_s25 = scalar_lea.hbm %s469_s2, 256 }
  0x22   :  { %p189_p13 = scmp.ne.s32.totalorder %s469_s2, %s188_s25  ;;  %p192_p0 = scmp.lt.u32.totalorder %s188_s25, %s469_s2 }
  0x24   :  { %p194_p1 = pnand %p192_p0, %p189_p13 }
  0x26   :  { %197 = shalt.err (!%p194_p1)
}
  0x27   :  { %91 = dma.vmem_to_hbm [thread:$0]  %s343_s16, 256, %s469_s2, [#allocation7], %s273_s11, %s273_s11, %s274_s12   ;;  %v279_v10 = vmov 0   ;;  %vm62_vm4 = vcmp.eq.f32.partialorder %v335_v0, 3.0  ;;  %vm63_vm5 = vcmp.eq.f32.partialorder %v337_v1, 3.0 }
  0x28   :  { %v52_v11 = vsel %vm50_vm0, 1, %v279_v10  ;;  %v53_v12 = vsel %vm51_vm1, 1, %v279_v10  ;;  %v58_v13 = vsel %vm56_vm2, 1, %v279_v10  ;;  %v59_v14 = vsel %vm57_vm3, 1, %v279_v10  ;;  %s198_s19 = scalar_lea.vmem %s349_s18, 256  ;;  %p203_p3 = scmp.lt.s32.totalorder %s349_s18, %s349_s18 }
  0x29   :  { %54 = vst [vmem:[%s472_s5] sm:$0xff] %v52_v11  ;;  %55 = vst [vmem:[%s472_s5 + $0x8] sm:$0xff] %v53_v12  ;;  %p199_p2 = scmp.ne.s32.totalorder %s349_s18, %s198_s19  ;;  %p204_p4 = scmp.lt.s32.totalorder %s198_s19, %s198_s19 }
  0x2a   :  { %60 = vst [vmem:[%s473_s6] sm:$0xff] %v58_v13  ;;  %61 = vst [vmem:[%s473_s6 + $0x8] sm:$0xff] %v59_v14 }
  0x2b   :  { %p205_p5 = por %p204_p4, %p203_p3 }
  0x2d   :  { %p206_p6 = pnand %p205_p5, %p199_p2 }
  0x2f   :  { %209 = shalt.err (!%p206_p6)
}
  0x30   :  { %s210_s0 = scalar_lea.hbm %s468_s1, 256 }
  0x31   :  { %p211_p7 = scmp.ne.s32.totalorder %s468_s1, %s210_s0  ;;  %p214_p8 = scmp.lt.u32.totalorder %s210_s0, %s468_s1 }
  0x33   :  { %p216_p9 = pnand %p214_p8, %p211_p7 }
  0x35   :  { %219 = shalt.err (!%p216_p9)
}
  0x36   :  { %79 = dma.vmem_to_hbm [thread:$0]  %s349_s18, 256, %s468_s1, [#allocation4], %s273_s11, %s273_s11, %s274_s12   ;;  %v64_v15 = vsel %vm62_vm4, 1, %v279_v10  ;;  %v65_v16 = vsel %vm63_vm5, 1, %v279_v10 }
  0x37   :  { %s220_s28 = scalar_lea.vmem %s355_s20, 256  ;;  %p225_p11 = scmp.lt.s32.totalorder %s355_s20, %s355_s20 }
  0x38   :  { %p221_p10 = scmp.ne.s32.totalorder %s355_s20, %s220_s28  ;;  %p226_p12 = scmp.lt.s32.totalorder %s220_s28, %s220_s28 }
  0x3a   :  { %p227_p13 = por %p226_p12, %p225_p11 }
  0x3c   :  { %p228_p0 = pnand %p227_p13, %p221_p10 }
  0x3e   :  { %231 = shalt.err (!%p228_p0)
}
  0x3f   :  { %s232_s8 = scalar_lea.hbm %s470_s3, 256 }
  0x40   :  { %p233_p1 = scmp.ne.s32.totalorder %s470_s3, %s232_s8  ;;  %p236_p2 = scmp.lt.u32.totalorder %s232_s8, %s470_s3 }
  0x42   :  { %p238_p3 = pnand %p236_p2, %p233_p1 }
  0x44   :  { %241 = shalt.err (!%p238_p3)
}
  0x45   :  { %103 = dma.vmem_to_hbm [thread:$0]  %s355_s20, 256, %s470_s3, [#allocation7], %s273_s11, %s273_s11, %s274_s12  }
  0x46   :  { %66 = vst [vmem:[%s474_s7] sm:$0xff] %v64_v15  ;;  %67 = vst [vmem:[%s474_s7 + $0x8] sm:$0xff] %v65_v16  ;;  %s242_s19 = scalar_lea.vmem %s357_s22, 256  ;;  %p247_p5 = scmp.lt.s32.totalorder %s357_s22, %s357_s22 }
  0x47   :  { %p243_p4 = scmp.ne.s32.totalorder %s357_s22, %s242_s19  ;;  %p248_p6 = scmp.lt.s32.totalorder %s242_s19, %s242_s19 }
  0x49   :  { %p249_p7 = por %p248_p6, %p247_p5 }
  0x4b   :  { %p250_p8 = pnand %p249_p7, %p243_p4 }
  0x4d   :  { %253 = shalt.err (!%p250_p8)
}
  0x4e   :  { %s254_s3 = scalar_lea.hbm %s471_s4, 256 }
  0x4f   :  { %p255_p9 = scmp.ne.s32.totalorder %s471_s4, %s254_s3  ;;  %p258_p10 = scmp.lt.u32.totalorder %s254_s3, %s471_s4 }
  0x51   :  { %p260_p11 = pnand %p258_p10, %p255_p9 }
  0x53   :  { %263 = shalt.err (!%p260_p11)
}
  0x54   :  { %115 = dma.vmem_to_hbm [thread:$0]  %s357_s22, 256, %s471_s4, [#allocation10], %s273_s11, %s273_s11, %s274_s12  }
  0x55   :  { %266 = dma.done.wait [#allocation4], 256  }
  0x56   :  { %267 = vsyncadd [#allocation4], 4294967040 }
  0x57   :  { %268 = dma.done.wait [#allocation7], 512  }
  0x58   :  { %269 = vsyncadd [#allocation7], 4294966784 }
  0x59   :  { %270 = dma.done.wait [#allocation10], 256  }
  0x5a   :  { %271 = vsyncadd [#allocation10], 4294967040 }
  0x5b   :  { %140 = vsyncpa [#allocation3], 1 }
  0x5c   :  { %141 = vsyncpa [#allocation4], 1 }
  0x5d   :  { %142 = vsyncpa [#allocation7], 1 }
  0x5e   :  { %143 = vsyncpa [#allocation10], 1 }

</bundles_post_ra>
